<compile_context>
chip_gen: v6e
topology: v6e:2x2x1
jax: 0.10.0
libtpu: 0.0.40
codegen_flags: <defaults>
</compile_context>

<pallas_src>
import functools

import jax
import jax.numpy as jnp
from jax.experimental import pallas as pl
from jax.experimental.pallas import tpu as pltpu


def _vit_attn_kernel(qx_ref, kx_ref, wq_ref, wkv_ref, wo_ref, bo_ref,
                     out_ref, acc_ref, *, heads, dim_head, scale):
    """One (batch b, q-tile qi) grid step.

    Block shapes:
      qx_ref : (1, tq, dim)        kx_ref : (1, Nk, dim)
      wq_ref : (dim, inner)        wkv_ref: (dim, 2*inner)
      wo_ref : (inner, dim)        bo_ref : (1, dim)  (f32)
      out_ref: (1, tq, dim)        acc_ref: (tq, inner) f32 scratch
    """
    inner = heads * dim_head
    mm_dtype = qx_ref.dtype  # matmul operand dtype (bf16 or f32)

    qx = qx_ref[0]           # (tq, dim)
    kx = kx_ref[0]           # (Nk, dim)

    # Fused projections for ALL heads (MXU-friendly: N = inner / 2*inner).
    # scale is folded into q here (tq*inner mults instead of tq*Nk).
    q_all = (jnp.dot(qx, wq_ref[...], preferred_element_type=jnp.float32)
             * scale).astype(mm_dtype)                              # (tq, inner)
    kv_all = jnp.dot(kx, wkv_ref[...],
                     preferred_element_type=jnp.float32).astype(mm_dtype)  # (Nk, 2*inner)

    # Per-head attention; heads is a small Python int -> static unroll.
    for h in range(heads):
        lo = h * dim_head
        qh = q_all[:, lo:lo + dim_head]                     # (tq, dh)
        kh = kv_all[:, lo:lo + dim_head]                    # (Nk, dh)
        vh = kv_all[:, inner + lo:inner + lo + dim_head]    # (Nk, dh)

        # Scores: contract last dims directly (no explicit k transpose).
        dots = jax.lax.dot_general(
            qh, kh, dimension_numbers=(((1,), (1,)), ((), ())),
            preferred_element_type=jnp.float32)             # (tq, Nk) f32

        # softmax_one: exp(x - m) / (1 + sum(exp(x - m))); denominator folded
        # into the (tq, dh) result instead of dividing the (tq, Nk) matrix.
        m = jnp.max(dots, axis=-1, keepdims=True)
        e = jnp.exp(dots - m)
        inv = pl.reciprocal(1.0 + jnp.sum(e, axis=-1, keepdims=True),
                            approx=True)                    # (tq, 1)
        oh = jnp.dot(e.astype(mm_dtype), vh,
                     preferred_element_type=jnp.float32) * inv  # (tq, dh) f32

        acc_ref[:, lo:lo + dim_head] = oh

    # Single fused output projection over all heads + bias; one dense store.
    o_all = acc_ref[...].astype(mm_dtype)                   # (tq, inner)
    out = jnp.dot(o_all, wo_ref[...], preferred_element_type=jnp.float32)
    out_ref[0] = (out + bo_ref[...]).astype(out_ref.dtype)


def vit_attention(qx, kx, params, *, heads, dim_head,
                  matmul_dtype=jnp.bfloat16, q_tile=256):
    """Pallas implementation of vitAttention.forward (eval mode, dropout=0)."""
    B, Nq, dim = qx.shape
    Bk, Nk, dim_k = kx.shape
    assert Bk == B and dim_k == dim
    inner = heads * dim_head
    scale = float(dim_head) ** -0.5

    mm = jnp.dtype(matmul_dtype)
    # PyTorch Linear stores weight as (out, in); y = x @ W^T. Transpose once.
    wq_t = params["wq"].T.astype(mm)            # (dim, inner)
    wkv_t = params["wkv"].T.astype(mm)          # (dim, 2*inner)  [k chunk | v chunk]
    wo_t = params["wo"].T.astype(mm)            # (inner, dim)
    bo = params["bo"].reshape(1, dim).astype(jnp.float32)
    qx_m = qx.astype(mm)
    kx_m = kx.astype(mm)

    # Query tiling: full Nq if small, otherwise a multiple-of-8 tile.
    tq = Nq if Nq <= q_tile else q_tile
    if tq < Nq and tq % 8 != 0:
        raise ValueError("q_tile must be a multiple of 8")
    n_qt = pl.cdiv(Nq, tq)
    grid = (B, n_qt)

    kernel = functools.partial(_vit_attn_kernel, heads=heads,
                               dim_head=dim_head, scale=scale)

    flops = 2 * B * (Nq * dim * inner                 # q projection
                     + n_qt * Nk * dim * 2 * inner    # kv projection (per q tile)
                     + 2 * heads * Nq * Nk * dim_head  # scores + attn@v
                     + Nq * inner * dim)              # output projection
    cost = pl.CostEstimate(
        flops=flops,
        transcendentals=B * heads * Nq * Nk,
        bytes_accessed=(qx_m.size * mm.itemsize
                        + n_qt * kx_m.size * mm.itemsize
                        + (wq_t.size + wkv_t.size + wo_t.size) * mm.itemsize
                        + bo.size * 4 + B * Nq * dim * 4))

    out = pl.pallas_call(
        kernel,
        out_shape=jax.ShapeDtypeStruct((B, Nq, dim), jnp.float32),
        grid_spec=pltpu.PrefetchScalarGridSpec(
            num_scalar_prefetch=0,
            grid=grid,
            in_specs=[
                pl.BlockSpec((1, tq, dim), lambda b, qi: (b, qi, 0)),   # qx tile
                pl.BlockSpec((1, Nk, dim), lambda b, qi: (b, 0, 0)),    # kx (full seq)
                pl.BlockSpec((dim, inner), lambda b, qi: (0, 0)),       # Wq (whole)
                pl.BlockSpec((dim, 2 * inner), lambda b, qi: (0, 0)),   # Wkv (whole)
                pl.BlockSpec((inner, dim), lambda b, qi: (0, 0)),       # Wo (whole)
                pl.BlockSpec((1, dim), lambda b, qi: (0, 0)),           # bias (f32)
            ],
            out_specs=pl.BlockSpec((1, tq, dim), lambda b, qi: (b, qi, 0)),
            scratch_shapes=[pltpu.VMEM((tq, inner), jnp.float32)],
        ),
        compiler_params=pltpu.CompilerParams(
            dimension_semantics=("parallel", "parallel"),
            vmem_limit_bytes=48 * 1024 * 1024,
        ),
        cost_estimate=cost,
    )(qx_m, kx_m, wq_t, wkv_t, wo_t, bo)
    return out


def vit_attention_ref(qx, kx, params, *, heads, dim_head):
    """Pure-JAX reference mirroring the PyTorch forward (f32)."""
    B, Nq, dim = qx.shape
    inner = heads * dim_head
    scale = float(dim_head) ** -0.5
    q = qx @ params["wq"].T                                  # (B, Nq, inner)
    kv = kx @ params["wkv"].T                                # (B, Nk, 2*inner)
    k, v = kv[..., :inner], kv[..., inner:]

    def split_heads(t):
        b, n, _ = t.shape
        return t.reshape(b, n, heads, dim_head).transpose(0, 2, 1, 3)

    q, k, v = split_heads(q), split_heads(k), split_heads(v)
    dots = jnp.einsum("bhqd,bhkd->bhqk", q, k) * scale
    m = jnp.max(dots, axis=-1, keepdims=True)
    e = jnp.exp(dots - m)
    attn = e / (1.0 + jnp.sum(e, axis=-1, keepdims=True))     # softmax_one
    out = jnp.einsum("bhqk,bhkd->bhqd", attn, v)
    out = out.transpose(0, 2, 1, 3).reshape(B, Nq, inner)
    return out @ params["wo"].T + params["bo"]                # to_out Linear (+Dropout p=0)


if __name__ == "__main__":
    # Small config consistent with the module.
    B, Nq, Nk = 2, 16, 12
    dim, heads, dim_head = 32, 2, 16
    inner = heads * dim_head

    key = jax.random.PRNGKey(0)
    k_qx, k_kx, k_wq, k_wkv, k_wo, k_bo = jax.random.split(key, 6)

    qx = jax.random.normal(k_qx, (B, Nq, dim), dtype=jnp.float32)
    kx = jax.random.normal(k_kx, (B, Nk, dim), dtype=jnp.float32)

    # Deterministic synthetic parameters (PyTorch Linear layout: (out, in)).
    params = {
        "wq": 0.1 * jax.random.normal(k_wq, (inner, dim), dtype=jnp.float32),
        "wkv": 0.1 * jax.random.normal(k_wkv, (2 * inner, dim), dtype=jnp.float32),
        "wo": 0.1 * jax.random.normal(k_wo, (dim, inner), dtype=jnp.float32),
        "bo": 0.1 * jax.random.normal(k_bo, (dim,), dtype=jnp.float32),
    }

    ref = vit_attention_ref(qx, kx, params, heads=heads, dim_head=dim_head)

    # 1) f32-matmul path, exercising the query-tile grid (tq=8 -> grid (B, 2)).
    out_f32 = vit_attention(qx, kx, params, heads=heads, dim_head=dim_head,
                            matmul_dtype=jnp.float32, q_tile=8)
    out_f32 = jax.block_until_ready(out_f32)
    assert out_f32.shape == (B, Nq, dim)
    err_f32 = float(jnp.max(jnp.abs(out_f32 - ref)))
    assert err_f32 < 1e-2, err_f32  # approx reciprocal tolerance

    # 2) default bf16-matmul path (single q tile).
    out_bf16 = vit_attention(qx, kx, params, heads=heads, dim_head=dim_head)
    out_bf16 = jax.block_until_ready(out_bf16)
    err_bf16 = float(jnp.max(jnp.abs(out_bf16 - ref)))
    assert err_bf16 < 5e-2, err_bf16

    print("KERNEL_OK")
</pallas_src>

<mosaic_0001>
module attributes {stable_mosaic.version = 11 : i64} {
  func.func @_vit_attn_kernel(%arg0: i32, %arg1: i32, %arg2: memref<1x8x32xf32, #tpu.memory_space<vmem>>, %arg3: memref<1x12x32xf32, #tpu.memory_space<vmem>>, %arg4: memref<32x32xf32, #tpu.memory_space<vmem>>, %arg5: memref<32x64xf32, #tpu.memory_space<vmem>>, %arg6: memref<32x32xf32, #tpu.memory_space<vmem>>, %arg7: memref<1x32xf32, #tpu.memory_space<vmem>>, %arg8: memref<1x8x32xf32, #tpu.memory_space<vmem>>, %arg9: memref<8x32xf32, #tpu.memory_space<vmem>>) attributes {dimension_semantics = [#tpu.dimension_semantics<parallel>, #tpu.dimension_semantics<parallel>], iteration_bounds = array<i64: 2, 2>, scalar_prefetch = 0 : i64, scratch_operands = 1 : i64, tpu.core_type = #tpu.core_type<tc>, window_params = [{transform_indices = @transform_0, window_bounds = array<i64: 1, 8, 32>}, {transform_indices = @transform_1, window_bounds = array<i64: 1, 12, 32>}, {pipeline_mode = #tpu.pipeline_mode<synchronous>, transform_indices = @transform_2, window_bounds = array<i64: 32, 32>}, {pipeline_mode = #tpu.pipeline_mode<synchronous>, transform_indices = @transform_3, window_bounds = array<i64: 32, 64>}, {pipeline_mode = #tpu.pipeline_mode<synchronous>, transform_indices = @transform_4, window_bounds = array<i64: 32, 32>}, {pipeline_mode = #tpu.pipeline_mode<synchronous>, transform_indices = @transform_5, window_bounds = array<i64: 1, 32>}, {transform_indices = @transform_6, window_bounds = array<i64: 1, 8, 32>}]} {
    %c0 = arith.constant 0 : index
    %c0_0 = arith.constant 0 : index
    %c0_1 = arith.constant 0 : index
    %0 = vector.load %arg2[%c0, %c0_0, %c0_1] : memref<1x8x32xf32, #tpu.memory_space<vmem>>, vector<1x8x32xf32>
    %1 = vector.shape_cast %0 : vector<1x8x32xf32> to vector<8x32xf32>
    %c0_2 = arith.constant 0 : index
    %c0_3 = arith.constant 0 : index
    %c0_4 = arith.constant 0 : index
    %2 = vector.load %arg3[%c0_2, %c0_3, %c0_4] : memref<1x12x32xf32, #tpu.memory_space<vmem>>, vector<1x12x32xf32>
    %3 = vector.shape_cast %2 : vector<1x12x32xf32> to vector<12x32xf32>
    %c0_5 = arith.constant 0 : index
    %c0_6 = arith.constant 0 : index
    %4 = vector.load %arg4[%c0_5, %c0_6] : memref<32x32xf32, #tpu.memory_space<vmem>>, vector<32x32xf32>
    %cst = arith.constant dense<0.000000e+00> : vector<8x32xf32>
    %5 = tpu.matmul %1, %4, %cst {dimension_numbers = #tpu.dot_dimension_numbers<[1], [0], [0], [1], [0, 0, 1, 1], [], []>} : vector<8x32xf32>, vector<32x32xf32>, vector<8x32xf32> -> vector<8x32xf32>
    %cst_7 = arith.constant 2.500000e-01 : f32
    %6 = vector.broadcast %cst_7 : f32 to vector<8x32xf32>
    %7 = arith.mulf %5, %6 : vector<8x32xf32>
    %c0_8 = arith.constant 0 : index
    %c0_9 = arith.constant 0 : index
    %8 = vector.load %arg5[%c0_8, %c0_9] : memref<32x64xf32, #tpu.memory_space<vmem>>, vector<32x64xf32>
    %cst_10 = arith.constant dense<0.000000e+00> : vector<12x64xf32>
    %9 = tpu.matmul %3, %8, %cst_10 {dimension_numbers = #tpu.dot_dimension_numbers<[1], [0], [0], [1], [0, 0, 1, 1], [], []>} : vector<12x32xf32>, vector<32x64xf32>, vector<12x64xf32> -> vector<12x64xf32>
    %10 = vector.extract_strided_slice %7 {offsets = [0, 0], sizes = [8, 16], strides = [1, 1]} : vector<8x32xf32> to vector<8x16xf32>
    %11 = vector.extract_strided_slice %9 {offsets = [0, 0], sizes = [12, 16], strides = [1, 1]} : vector<12x64xf32> to vector<12x16xf32>
    %12 = vector.extract_strided_slice %9 {offsets = [0, 32], sizes = [12, 16], strides = [1, 1]} : vector<12x64xf32> to vector<12x16xf32>
    %cst_11 = arith.constant dense<0.000000e+00> : vector<8x12xf32>
    %13 = tpu.matmul %10, %11, %cst_11 {dimension_numbers = #tpu.dot_dimension_numbers<[1], [1], [0], [0], [0, 0, 1, 0], [], []>} : vector<8x16xf32>, vector<12x16xf32>, vector<8x12xf32> -> vector<8x12xf32>
    %cst_12 = arith.constant dense<0xFF800000> : vector<8xf32>
    %14 = vector.multi_reduction <maximumf>, %13, %cst_12 [1] : vector<8x12xf32> to vector<8xf32>
    %15 = vector.shape_cast %14 : vector<8xf32> to vector<8x1xf32>
    %16 = vector.broadcast %15 : vector<8x1xf32> to vector<8x12xf32>
    %17 = arith.subf %13, %16 : vector<8x12xf32>
    %18 = math.exp %17 : vector<8x12xf32>
    %cst_13 = arith.constant dense<0.000000e+00> : vector<8xf32>
    %19 = vector.multi_reduction <add>, %18, %cst_13 [1] : vector<8x12xf32> to vector<8xf32>
    %20 = vector.shape_cast %19 : vector<8xf32> to vector<8x1xf32>
    %cst_14 = arith.constant 1.000000e+00 : f32
    %21 = vector.broadcast %cst_14 : f32 to vector<8x1xf32>
    %22 = arith.addf %21, %20 : vector<8x1xf32>
    %23 = tpu.reciprocal %22 {approx = true} : vector<8x1xf32> -> vector<8x1xf32>
    %cst_15 = arith.constant dense<0.000000e+00> : vector<8x16xf32>
    %24 = tpu.matmul %18, %12, %cst_15 {dimension_numbers = #tpu.dot_dimension_numbers<[1], [0], [0], [1], [0, 0, 1, 1], [], []>} : vector<8x12xf32>, vector<12x16xf32>, vector<8x16xf32> -> vector<8x16xf32>
    %25 = vector.broadcast %23 : vector<8x1xf32> to vector<8x16xf32>
    %26 = arith.mulf %24, %25 : vector<8x16xf32>
    %c0_16 = arith.constant 0 : index
    %c0_17 = arith.constant 0 : index
    %27 = vector.load %arg9[%c0_16, %c0_17] : memref<8x32xf32, #tpu.memory_space<vmem>>, vector<8x16xf32>
    tpu.vector_store %arg9[%c0_16, %c0_17], %26 {strides = array<i32>} : memref<8x32xf32, #tpu.memory_space<vmem>>, vector<8x16xf32>,
    %28 = vector.extract_strided_slice %7 {offsets = [0, 16], sizes = [8, 16], strides = [1, 1]} : vector<8x32xf32> to vector<8x16xf32>
    %29 = vector.extract_strided_slice %9 {offsets = [0, 16], sizes = [12, 16], strides = [1, 1]} : vector<12x64xf32> to vector<12x16xf32>
    %30 = vector.extract_strided_slice %9 {offsets = [0, 48], sizes = [12, 16], strides = [1, 1]} : vector<12x64xf32> to vector<12x16xf32>
    %cst_18 = arith.constant dense<0.000000e+00> : vector<8x12xf32>
    %31 = tpu.matmul %28, %29, %cst_18 {dimension_numbers = #tpu.dot_dimension_numbers<[1], [1], [0], [0], [0, 0, 1, 0], [], []>} : vector<8x16xf32>, vector<12x16xf32>, vector<8x12xf32> -> vector<8x12xf32>
    %cst_19 = arith.constant dense<0xFF800000> : vector<8xf32>
    %32 = vector.multi_reduction <maximumf>, %31, %cst_19 [1] : vector<8x12xf32> to vector<8xf32>
    %33 = vector.shape_cast %32 : vector<8xf32> to vector<8x1xf32>
    %34 = vector.broadcast %33 : vector<8x1xf32> to vector<8x12xf32>
    %35 = arith.subf %31, %34 : vector<8x12xf32>
    %36 = math.exp %35 : vector<8x12xf32>
    %cst_20 = arith.constant dense<0.000000e+00> : vector<8xf32>
    %37 = vector.multi_reduction <add>, %36, %cst_20 [1] : vector<8x12xf32> to vector<8xf32>
    %38 = vector.shape_cast %37 : vector<8xf32> to vector<8x1xf32>
    %cst_21 = arith.constant 1.000000e+00 : f32
    %39 = vector.broadcast %cst_21 : f32 to vector<8x1xf32>
    %40 = arith.addf %39, %38 : vector<8x1xf32>
    %41 = tpu.reciprocal %40 {approx = true} : vector<8x1xf32> -> vector<8x1xf32>
    %cst_22 = arith.constant dense<0.000000e+00> : vector<8x16xf32>
    %42 = tpu.matmul %36, %30, %cst_22 {dimension_numbers = #tpu.dot_dimension_numbers<[1], [0], [0], [1], [0, 0, 1, 1], [], []>} : vector<8x12xf32>, vector<12x16xf32>, vector<8x16xf32> -> vector<8x16xf32>
    %43 = vector.broadcast %41 : vector<8x1xf32> to vector<8x16xf32>
    %44 = arith.mulf %42, %43 : vector<8x16xf32>
    %c0_23 = arith.constant 0 : index
    %c16 = arith.constant 16 : index
    %45 = vector.load %arg9[%c0_23, %c16] : memref<8x32xf32, #tpu.memory_space<vmem>>, vector<8x16xf32>
    tpu.vector_store %arg9[%c0_23, %c16], %44 {strides = array<i32>} : memref<8x32xf32, #tpu.memory_space<vmem>>, vector<8x16xf32>,
    %c0_24 = arith.constant 0 : index
    %c0_25 = arith.constant 0 : index
    %46 = vector.load %arg9[%c0_24, %c0_25] : memref<8x32xf32, #tpu.memory_space<vmem>>, vector<8x32xf32>
    %c0_26 = arith.constant 0 : index
    %c0_27 = arith.constant 0 : index
    %47 = vector.load %arg6[%c0_26, %c0_27] : memref<32x32xf32, #tpu.memory_space<vmem>>, vector<32x32xf32>
    %cst_28 = arith.constant dense<0.000000e+00> : vector<8x32xf32>
    %48 = tpu.matmul %46, %47, %cst_28 {dimension_numbers = #tpu.dot_dimension_numbers<[1], [0], [0], [1], [0, 0, 1, 1], [], []>} : vector<8x32xf32>, vector<32x32xf32>, vector<8x32xf32> -> vector<8x32xf32>
    %c0_29 = arith.constant 0 : index
    %c0_30 = arith.constant 0 : index
    %49 = vector.load %arg7[%c0_29, %c0_30] : memref<1x32xf32, #tpu.memory_space<vmem>>, vector<1x32xf32>
    %50 = vector.broadcast %49 : vector<1x32xf32> to vector<8x32xf32>
    %51 = arith.addf %48, %50 : vector<8x32xf32>
    %c0_31 = arith.constant 0 : index
    %c0_32 = arith.constant 0 : index
    %c0_33 = arith.constant 0 : index
    %52 = vector.load %arg8[%c0_31, %c0_32, %c0_33] : memref<1x8x32xf32, #tpu.memory_space<vmem>>, vector<1x8x32xf32>
    %53 = vector.shape_cast %52 : vector<1x8x32xf32> to vector<8x32xf32>
    %54 = vector.shape_cast %51 : vector<8x32xf32> to vector<1x8x32xf32>
    tpu.vector_store %arg8[%c0_31, %c0_32, %c0_33], %54 {strides = array<i32>} : memref<1x8x32xf32, #tpu.memory_space<vmem>>, vector<1x8x32xf32>,
    return
  }
  func.func @transform_0(%arg0: i32, %arg1: i32) -> (i32, i32, i32) {
    %c0_i32 = arith.constant 0 : i32
    %c0_i32_0 = arith.constant 0 : i32
    return %arg0, %arg1, %c0_i32 : i32, i32, i32
  }
  func.func @transform_1(%arg0: i32, %arg1: i32) -> (i32, i32, i32) {
    %c0_i32 = arith.constant 0 : i32
    %c0_i32_0 = arith.constant 0 : i32
    %c0_i32_1 = arith.constant 0 : i32
    return %arg0, %c0_i32, %c0_i32_0 : i32, i32, i32
  }
  func.func @transform_2(%arg0: i32, %arg1: i32) -> (i32, i32) {
    %c0_i32 = arith.constant 0 : i32
    %c0_i32_0 = arith.constant 0 : i32
    %c0_i32_1 = arith.constant 0 : i32
    return %c0_i32, %c0_i32_0 : i32, i32
  }
  func.func @transform_3(%arg0: i32, %arg1: i32) -> (i32, i32) {
    %c0_i32 = arith.constant 0 : i32
    %c0_i32_0 = arith.constant 0 : i32
    %c0_i32_1 = arith.constant 0 : i32
    return %c0_i32, %c0_i32_0 : i32, i32
  }
  func.func @transform_4(%arg0: i32, %arg1: i32) -> (i32, i32) {
    %c0_i32 = arith.constant 0 : i32
    %c0_i32_0 = arith.constant 0 : i32
    %c0_i32_1 = arith.constant 0 : i32
    return %c0_i32, %c0_i32_0 : i32, i32
  }
  func.func @transform_5(%arg0: i32, %arg1: i32) -> (i32, i32) {
    %c0_i32 = arith.constant 0 : i32
    %c0_i32_0 = arith.constant 0 : i32
    %c0_i32_1 = arith.constant 0 : i32
    return %c0_i32, %c0_i32_0 : i32, i32
  }
  func.func @transform_6(%arg0: i32, %arg1: i32) -> (i32, i32, i32) {
    %c0_i32 = arith.constant 0 : i32
    %c0_i32_0 = arith.constant 0 : i32
    return %arg0, %arg1, %c0_i32 : i32, i32, i32
  }
}

</mosaic_0001>

<bundles_post_ra>
// kernel: tpu_custom_call.1
= control target key start
LH: loop header
LB: loop body
LE: loop exit
PB: predicated region body
PF: predicated region fallthrough
CT: control target
= control target key end

     0   :  { %11 = vsyncpa [#allocation4], 0  ;;  %s1800_s0 = inlined_call_operand.vmem [shape: f32[2,16,32], index: 0, kind: input, shape index: {}]   ;;  %s1801_s1 = inlined_call_operand.vmem [shape: f32[2,12,32], index: 1, kind: input, shape index: {}]   ;;  %s1802_s2 = inlined_call_operand.hbm [shape: f32[32,32], index: 2, kind: input, shape index: {}]   ;;  %s1803_s3 = inlined_call_operand.hbm [shape: f32[32,64], index: 3, kind: input, shape index: {}]   ;;  %s1804_s4 = inlined_call_operand.hbm [shape: f32[32,32], index: 4, kind: input, shape index: {}]   ;;  %s1805_s5 = inlined_call_operand.vmem [shape: f32[1,32], index: 5, kind: input, shape index: {}]   ;;  %s1806_s6 = inlined_call_operand.hbm [shape: f32[2,16,32], index: 6, kind: output, shape index: {}]  }
   0x1   :  { %12 = vsyncpa [#allocation7], 0 }
   0x2   :  { %13 = vsyncpa [#allocation5], 0 }
   0x3   :  { %15 = vsyncpa [#allocation5 + $0x1], 0  ;;  %s1555_s21 = smov 0   ;;  %s1557_s22 = smov 0  }
   0x4   :  { %s1559_s23 = smov 0   ;;  %s1561_s24 = smov 0  }
   0x5   :  { %s1563_s25 = smov 0   ;;  %s1565_s26 = smov 0  }
   0x6   :  { %s1567_s27 = smov 0   ;;  %s1569_s28 = smov 0  }
   0x7 LB: > { %s1084_s29 = sadd.s32 4294967295, %s1506_s28   ;;  %s1085_s30 = sadd.s32 4294967294, %s1506_s28   ;;  %s1506_s28 = sphi %s1569_s28, %s21_s28   ;;  %s1502_s27 = sphi %s1567_s27, %s1825_s27   ;;  %s1498_s26 = sphi %s1565_s26, %s1824_s26   ;;  %s1494_s25 = sphi %s1563_s25, %s1823_s25   ;;  %s1490_s24 = sphi %s1561_s24, %s1822_s24   ;;  %s1486_s23 = sphi %s1559_s23, %s1821_s23   ;;  %s1482_s22 = sphi %s1557_s22, %s1820_s22   ;;  %s1478_s21 = sphi %s1555_s21, %s1819_s21  }
   0x8   : > { %s30_s7 = sadd.s32 1, %s1498_s26  ;;  %s33_s8 = sadd.s32 1, %s1502_s27 }
   0x9   : > { %p31_p0 = scmp.ge.s32.totalorder %s30_s7, 2  ;;  %s180_s9 = sadd.s32 1, %s1486_s23 }
   0xa   : > { %p190_p1 = scmp.ne.s32.totalorder %s1486_s23, %s1482_s22  ;;  %p191_p2 = scmp.eq.s32.totalorder %s1084_s29, 3 }
   0xb   : > { %s1827_s7 = smov (%p31_p0, %s30_s7), 0  ;;  %s1829_s8 = smov (!%p31_p0, %s33_s8), %s1502_s27 }
   0xc   : > { %1809 = sst [smem:[#allocation13_spill]] %s1827_s7  ;;  %s176_s10 = ssub.s32 %s1498_s26, %s1827_s7 }
   0xd   : > { %p1607_p3 = por %p191_p2, %p190_p1  ;;  %p35_p4 = scmp.ge.s32.totalorder %s1829_s8, 2 }
   0xe   : > { %p196_p5 = scmp.ne.s32.totalorder %s1482_s22, %s1478_s21  ;;  %p197_p6 = scmp.eq.s32.totalorder %s1085_s30, 3 }
   0xf   : > { %p1086_p7 = scmp.ge.s32.totalorder %s1506_s28, 1  ;;  %s1831_s8 = smov (%p35_p4, %s1829_s8), 0 }
  0x10   : > { %1811 = sst [smem:[#allocation14_spill]] %s1831_s8  ;;  %p1616_p8 = por %p197_p6, %p196_p5 }
  0x11   : > { %p204_p9 = scmp.lt.s32.totalorder %s1506_s28, 5  ;;  %s175_s13 = ssub.s32 %s1502_s27, %s1831_s8 }
  0x12   : > { %s1812_s12 = scalar_select %p1616_p8, 1, 0 }
  0x13   : > { %s177_s14 = sor.u32 %s176_s10, %s175_s13  ;;  %p1623_p10 = pnand %p1086_p7, %p204_p9 }
  0x14   : > { %p178_p11 = scmp.eq.s32.totalorder %s177_s14, 0  ;;  %p1627_p12 = scmp.eq.s32.totalorder %s1084_s29, 0 }
  0x15   : > { %p1224_p13 = pneg %p1623_p10  ;;  %s1508_s19 = smov [#allocation6]  }
  0x16   : > { %s1634_s17 = scalar_select %p178_p11, %s1486_s23, %s180_s9  }
  0x17   : > { %p1638_p0 = pnand %p1627_p12, %p1224_p13  ;;  %s229_s20 = sshll.u32 %s1508_s19, 4  ;;  %s230_s20 = int_to_ptr.vmem [resolvable:$true] %s229_s20 }
  0x18   : > { %s1339_s29 = scalar_lea.vmem %s230_s20, 512  ;;  %p1347_p6 = scmp.lt.s32.totalorder %s230_s20, %s230_s20 }
  0x19   : > { %p1330_p1 = pneg %p1638_p0  ;;  %p1340_p2 = scmp.ne.s32.totalorder %s230_s20, %s1339_s29 }
  0x1a   : > { %p1348_p7 = scmp.lt.s32.totalorder %s1339_s29, %s1339_s29 }
  0x1b   : > { %p1342_p4 = pnand %p1340_p2, %p1330_p1 }
  0x1c   : > { %p1349_p9 = por %p1348_p7, %p1347_p6 }
  0x1d   : > { %p1343_p5 = pneg %p1342_p4 }
  0x1f   : > { %p1350_p11 = pnand %p1349_p9, %p1343_p5 }
  0x21   : > { %1353 = shalt.err (!%p1350_p11)
}
  0x22   : > { %s1509_s30 = smov 128   ;;  %s1510_s9 = smov 8  }
  0x23   : > { %1230 = dma.hbm_to_vmem [thread:$0]  (!%p1638_p0), %s1803_s3, 512, %s230_s20, [#allocation7], %s1509_s30, %s1509_s30, %s1510_s9  }
  0x24   : > { %s1511_s14 = smov [#allocation3]   ;;  %s1512_s8 = smov [#allocation8]  }
  0x25   : > { %s216_s19 = sshll.u32 %s1511_s14, 4  ;;  %s242_s7 = sshll.u32 %s1512_s8, 4  ;;  %s217_s19 = int_to_ptr.vmem [resolvable:$true] %s216_s19  ;;  %s243_s7 = int_to_ptr.vmem [resolvable:$true] %s242_s7 }
  0x26   : > { %s1365_s29 = scalar_lea.vmem %s217_s19, 512  ;;  %p1373_p5 = scmp.lt.s32.totalorder %s217_s19, %s217_s19 }
  0x27   : > { %p1366_p13 = scmp.ne.s32.totalorder %s217_s19, %s1365_s29  ;;  %p1374_p6 = scmp.lt.s32.totalorder %s1365_s29, %s1365_s29 }
  0x29   : > { %p1368_p2 = pnand %p1366_p13, %p1330_p1  ;;  %p1375_p7 = por %p1374_p6, %p1373_p5 }
  0x2b   : > { %p1369_p4 = pneg %p1368_p2 }
  0x2d   : > { %p1376_p9 = pnand %p1375_p7, %p1369_p4 }
  0x2f   : > { %1379 = shalt.err (!%p1376_p9)
}
  0x30   : > { %1227 = dma.hbm_to_vmem [thread:$0]  (!%p1638_p0), %s1802_s2, 512, %s217_s19, [#allocation4], %s1509_s30, %s1509_s30, %s1510_s9  }
  0x31   : > { %s1391_s10 = scalar_lea.vmem %s243_s7, 512  ;;  %p1399_p8 = scmp.lt.s32.totalorder %s243_s7, %s243_s7 }
  0x32   : > { %p1392_p11 = scmp.ne.s32.totalorder %s243_s7, %s1391_s10  ;;  %p1400_p5 = scmp.lt.s32.totalorder %s1391_s10, %s1391_s10 }
  0x34   : > { %p1394_p13 = pnand %p1392_p11, %p1330_p1  ;;  %p1401_p4 = por %p1400_p5, %p1399_p8 }
  0x36   : > { %p1395_p2 = pneg %p1394_p13 }
  0x38   : > { %p1402_p6 = pnand %p1401_p4, %p1395_p2 }
  0x3a   : > { %1405 = shalt.err (!%p1402_p6)
}
  0x3b   : > { %1233 = dma.hbm_to_vmem [thread:$0]  (!%p1638_p0), %s1804_s4, 512, %s243_s7, [#allocation7], %s1509_s30, %s1509_s30, %s1510_s9  }
  0x3c   : > { %280 = sbr.rel (%p1623_p10) target bundleno = 1512 (0x5e8), region = 44 }
  0x41   : > { %1465 = dma.done.wait (%p1627_p12), [#allocation4], 512  }
  0x42   : > { %1467 = vsyncadd (%p1627_p12), [#allocation4], 4294966784 }
  0x43   : > { %1469 = dma.done.wait (%p1627_p12), [#allocation7], 1024  }
  0x44   : > { %1471 = vsyncadd (%p1627_p12), [#allocation7], 4294966272  ;;  %p326_p8 = scmp.lt.s32.totalorder %s1494_s25, 1  ;;  %v1513_v0 = vmov 0.0   ;;  %vm1514_vm0 = vmmov 0   ;;  %p328_p10 = scmp.lt.s32.totalorder %s1490_s24, 1 }
  0x45   : > { %1149 = vmatprep.subr.mxu0 %v1513_v0  ;;  %1157 = vmatprep.mubr.msk.f32.mxu0 %vm1514_vm0, %v1513_v0  ;;  %v424_v1 = vld [vmem:[#allocation6 + $0x18] sm:$0xff]  ;;  %v423_v2 = vld [vmem:[#allocation6 + $0x10] sm:$0xff]  ;;  %v422_v5 = vld [vmem:[#allocation6 + $0x8] sm:$0xff]  ;;  %vm346_vm1 = vcmask 261120   ;;  %vm506_vm2 = vcmask 130048   ;;  %s1515_s14 = smov 96  }
  0x46   : > { %s327_s7 = scalar_select %p326_p8, %s1494_s25, 1  ;;  %v345_v3 = vld [vmem:[#allocation3 + $0x18] sm:$0xff]  ;;  %1160 = vmatprep.subr.mxu1 %v424_v1  ;;  %v344_v4 = vld [vmem:[#allocation3 + $0x10] sm:$0xff]  ;;  %v343_v7 = vld [vmem:[#allocation3 + $0x8] sm:$0xff]  ;;  %vm586_vm3 = vcmask 97280   ;;  %vm606_vm4 = vcmask 1043456  }
  0x47   : > { %s329_s15 = scalar_select %p328_p10, %s1490_s24, 1  ;;  %1150 = vmatpush3.msra.mxu0 %v345_v3  ;;  %1161 = vmatpush3.msra.mxu1 %v424_v1  ;;  %v421_v8 = vld [vmem:[#allocation6] sm:$0xff]  ;;  %v865_v48 = vld [vmem:[#allocation8 + $0x18] sm:$0xff]  ;;  %v864_v49 = vld [vmem:[#allocation8 + $0x10] sm:$0xff]  ;;  %vm859_vm5 = vcmask 261248  }
  0x48   : > { %s1096_s18 = sshll.u32 %s327_s7, 1  ;;  %s1120_s30 = sshll.u32 %s327_s7, 4  ;;  %1151 = vmatprep.subr.mxu0 %v1513_v0  ;;  %1162 = vmatprep.subr.mxu1 %v423_v2  ;;  %v342_v9 = vld [vmem:[#allocation3] sm:$0xff]  ;;  %v863_v50 = vld [vmem:[#allocation8 + $0x8] sm:$0xff]  ;;  %v1113_v58 = vld [vmem:[%s1805_s5] ss:$0 sm:$0xff] }
  0x49   : > { %s331_s9 = sadd.s32 %s1096_s18, %s329_s15  ;;  %s338_s29 = scalar_lea.vmem %s1801_s1, %s1120_s30  ;;  %1152 = vmatpush3.msra.mxu0 %v344_v4  ;;  %1163 = vmatpush3.msra.mxu1 %v423_v2  ;;  %v862_v51 = vld [vmem:[#allocation8] sm:$0xff] }
  0x4a   : > { %s1097_s20 = sshll.u32 %s331_s9, 3  ;;  %v340_v6 = vld [vmem:[%s338_s29] sm:$0xff]  ;;  %1153 = vmatprep.subr.mxu0 %v1513_v0  ;;  %1164 = vmatprep.subr.mxu1 %v422_v5  ;;  %v341_v10 = vld [vmem:[%s338_s29 + $0x8] sm:$0xf]  ;;  %s1516_s7 = smov 112  }
  0x4b   : > { %s333_s13 = scalar_lea.vmem %s1800_s0, %s1097_s20  ;;  %1168 = vmatprep.mubr.msk.f32.mxu1 %vm346_vm1, %v340_v6  ;;  %1165 = vmatpush3.msra.mxu1 %v422_v5  ;;  %s1517_s15 = smov 80  }
  0x4c   : > { %1154 = vmatpush3.msra.mxu0 %v343_v7  ;;  %v339_v11 = vld [vmem:[%s333_s13] sm:$0xff]  ;;  %1166 = vmatprep.subr.mxu1 %v421_v8  ;;  %s1518_s18 = smov 16   ;;  %s323_s30 = sand.u32 1, %s1482_s22  }
  0x4d   : > { %1155 = vmatprep.subr.mxu0 %v1513_v0  ;;  %1167 = vmatpush3.msra.mxu1 %v421_v8  ;;  %s1095_s9 = sshll.u32 %s323_s30, 3  ;;  %s1116_s16 = sshll.u32 %s1494_s25, 1 }
  0x4e   : > { %1156 = vmatpush3.msra.mxu0 %v342_v9  ;;  %1169 = vmatmul.mubr.msk.f32.vlgmr.msra.gmra.mxu1 %vm346_vm1, %v341_v10  ;;  %s959_s19 = sadd.s32 %s1490_s24, %s1116_s16  ;;  %s325_s10 = scalar_lea.vmem [#allocation9], %s1095_s9 }
  0x4f   : > { %1158 = vmatmul.mubr.msk.f32.vlgmr.msra.gmra.mxu0 %vm346_vm1, %v339_v11  ;;  %1171 = vmatprep.subr.mxu0 %v1513_v0  ;;  %s1117_s8 = sshll.u32 %s959_s19, 7  ;;  %s963_s13 = sshll.u32 %s325_s10, 4  ;;  %s964_s13 = int_to_ptr.vmem [resolvable:$true] %s963_s13 }
  0x50   : > { %1175 = vmatprep.mubr.msk.f32.mxu0 %vm1514_vm0, %v1513_v0  ;;  %1178 = vmatprep.subr.mxu1 %v1513_v0  ;;  %s948_s25 = scalar_lea.sflag [#allocation5], %s323_s30  ;;  %s1406_s24 = scalar_lea.vmem %s964_s13, 128 }
  0x51   : > { %1182 = vmatprep.mubr.msk.f32.mxu1 %vm1514_vm0, %v1513_v0  ;;  %p1407_p12 = scmp.ne.s32.totalorder %s964_s13, %s1406_s24 }
  0x53   : > { %p1408_p0 = pnand %p1407_p12, %p1607_p3 }
  0x55   : > { %p1409_p1 = pneg %p1408_p0 }
 0x10e   : > { %v1170_v12 = vpop.f32.mrf.mxu1 }
 0x10f   : > { %v416_v13 = vpop.f32.mrf.mxu0  ;;  %1172 = vmatpush3.xpose.msk.msra.mxu0 %vm506_vm2, %v1170_v12 }
 0x110   : > { %v497_v14 = vpop.f32.mrf.mxu1  ;;  %1173 = vmatprep.subr.mxu0 %v1513_v0  ;;  %v420_v16 = vmul.f32 0.25, %v416_v13 }
 0x111   : > { %v1159_v15 = vpop.f32.mrf.mxu0  ;;  %598 = vrot.lane.b32.xlu1 %v497_v14, %s1515_s14 }
 0x113   : > { %1174 = vmatpush3.xpose.msk.msra.mxu0 %vm506_vm2, %v497_v14 }
 0x114   : > { %1199 = vmatprep.subr.mxu0 %v1513_v0 }
 0x115   : > { %685 = vrot.lane.b32.xlu1 %v1170_v12, %s1516_s7 }
 0x116   : > { %1176 = vmatmul.mubr.msk.f32.vlgmr.msra.gmra.mxu0 %vm506_vm2, %v420_v16 }
 0x117   : > { %1207 = vmatprep.mubr.msk.f32.mxu0 %vm1514_vm0, %v1513_v0  ;;  %1200 = vmatpush3.msra.mxu0 %v865_v48 }
 0x118   : > { %1201 = vmatprep.subr.mxu0 %v1513_v0 }
 0x119   : > { %683 = vrot.lane.b32.xlu1 %v497_v14, %s1516_s7  ;;  %1202 = vmatpush3.msra.mxu0 %v864_v49 }
 0x11a   : > { %1203 = vmatprep.subr.mxu0 %v1513_v0 }
 0x11b   : > { %1204 = vmatpush3.msra.mxu0 %v863_v50 }
 0x11c   : > { %1205 = vmatprep.subr.mxu0 %v1513_v0 }
 0x11d   : > { %681 = vrot.lane.b32.xlu1 %v420_v16, %s1516_s7  ;;  %1206 = vmatpush3.msra.mxu0 %v862_v51 }
 0x183   : > { %v599_v24 = vpop.permute.xlu1 %598 }
 0x187   : > { %v686_v25 = vpop.permute.xlu1 %685 }
 0x18b   : > { %v684_v27 = vpop.permute.xlu1 %683 }
 0x18f   : > { %v682_v29 = vpop.permute.xlu1 %681 }
 0x1d6   : > { %v582_v17 = vpop.f32.mrf.mxu0 }
 0x1d7   : > { %v587_v18 = vsel %vm586_vm3, %v582_v17, -inf }
 0x1d8   : > { %588 = vmax.xlane.f32.xlu0 %v587_v18  ;;  %v1177_v19 = vpop.f32.mrf.mxu0 }
 0x1ee   : > { %600 = vrot.lane.b32.xlu0 %v1170_v12, %s1515_s14 }
 0x1f2   : > { %776 = vrot.lane.b32.xlu0 %v1170_v12, %s1517_s15 }
 0x1f6   : > { %774 = vrot.lane.b32.xlu0 %v497_v14, %s1517_s15  ;;  %s1753_s15 = scalar_lea.hbm %s1806_s6, %s1117_s8 }
 0x261   : > { %v589_v20 = vpop.xlane.xlu0 %588 }
 0x262   : > { %v590_v21 = vsub.f32 %v582_v17, %v589_v20 }
 0x264   : > { %v591_v22 = vmul.f32 1.442695, %v590_v21 }
 0x265   : > { %v601_v23 = vpop.permute.xlu0 %600 }
 0x266   : > { %1320 = vpow2.f32 %v591_v22  ;;  %1179 = vmatpush3.msk.msra.mxu1 %vm606_vm4, %v601_v23 }
 0x267   : > { %1180 = vmatprep.subr.mxu1 %v1513_v0 }
 0x268   : > { %1181 = vmatpush3.msra.mxu1 %v599_v24 }
 0x269   : > { %1185 = vmatprep.subr.mxu1 %v1513_v0  ;;  %v777_v28 = vpop.permute.xlu0 %776 }
 0x26d   : > { %v775_v30 = vpop.permute.xlu0 %774 }
 0x273   : > { %v1321_v26 = vpop.eup %1320 }
 0x274   : > { %1183 = vmatmul.mubr.msk.f32.vlgmr.msra.gmra.mxu1 %vm586_vm3, %v1321_v26  ;;  %v593_v36 = vsel %vm586_vm3, %v1321_v26, 0.0 }
 0x275   : > { %1186 = vmatpush3.xpose.msk.msra.mxu1 %vm506_vm2, %v686_v25  ;;  %1189 = vmatprep.mubr.msk.f32.mxu1 %vm1514_vm0, %v1513_v0 }
 0x276   : > { %1187 = vmatprep.subr.mxu1 %v1513_v0 }
 0x279   : > { %1188 = vmatpush3.xpose.msk.msra.mxu1 %vm506_vm2, %v684_v27 }
 0x27a   : > { %1192 = vmatprep.subr.mxu1 %v1513_v0 }
 0x27c   : > { %1190 = vmatmul.mubr.msk.f32.vlgmr.msra.gmra.mxu1 %vm506_vm2, %v682_v29 }
 0x27d   : > { %1193 = vmatpush3.msk.msra.mxu1 %vm606_vm4, %v777_v28  ;;  %1196 = vmatprep.mubr.msk.f32.mxu1 %vm1514_vm0, %v1513_v0 }
 0x27e   : > { %1194 = vmatprep.subr.mxu1 %v1513_v0 }
 0x27f   : > { %1195 = vmatpush3.msra.mxu1 %v775_v30 }
 0x334   : > { %v675_v31 = vpop.f32.mrf.mxu1 }
 0x336   : > { %v1184_v32 = vpop.f32.mrf.mxu1 }
 0x33c   : > { %v759_v33 = vpop.f32.mrf.mxu1 }
 0x33d   : > { %v763_v34 = vsel %vm586_vm3, %v759_v33, -inf }
 0x33e   : > { %764 = vmax.xlane.f32.xlu1 %v763_v34  ;;  %v1191_v35 = vpop.f32.mrf.mxu1 }
 0x342   : > { %594 = vadd.xlane.f32.xlu1 %v593_v36 }
 0x3c7   : > { %v765_v37 = vpop.xlane.xlu1 %764 }
 0x3c8   : > { %v766_v38 = vsub.f32 %v759_v33, %v765_v37 }
 0x3ca   : > { %v767_v39 = vmul.f32 1.442695, %v766_v38 }
 0x3cb   : > { %v595_v40 = vpop.xlane.xlu1 %594 }
 0x3cc   : > { %1322 = vpow2.f32 %v767_v39  ;;  %v596_v41 = vadd.f32 1.0, %v595_v40 }
 0x3ce   : > { %1324 = vrcp.f32 %v596_v41 }
 0x3d9   : > { %v1323_v42 = vpop.eup %1322 }
 0x3da   : > { %1197 = vmatmul.mubr.msk.f32.vlgmr.msra.gmra.mxu1 %vm586_vm3, %v1323_v42  ;;  %v769_v43 = vsel %vm586_vm3, %v1323_v42, 0.0 }
 0x3db   : > { %v1325_v44 = vpop.eup %1324  ;;  %770 = vadd.xlane.f32.xlu0 %v769_v43 }
 0x3dc   : > { %v679_v45 = vmul.f32 %v1325_v44, %v675_v31 }
 0x3de   : > { %680 = vst.msk [vmem:[#allocation2] sm:$0xff] %vm506_vm2, %v679_v45 }
 0x464   : > { %v771_v46 = vpop.xlane.xlu0 %770 }
 0x465   : > { %v772_v47 = vadd.f32 1.0, %v771_v46 }
 0x467   : > { %1326 = vrcp.f32 %v772_v47 }
 0x474   : > { %v1327_v52 = vpop.eup %1326 }
 0x49a   : > { %v850_v53 = vpop.f32.mrf.mxu1 }
 0x49b   : > { %v854_v54 = vmul.f32 %v1327_v52, %v850_v53 }
 0x49c   : > { %v1198_v55 = vpop.f32.mrf.mxu1 }
 0x49d   : > { %856 = vrot.lane.b32.xlu1 %v854_v54, %s1518_s18  ;;  %s1519_s18 = smov [#allocation9]  }
 0x49e   : > { %s1410_s9 = sshll.u32 %s1519_s18, 4  ;;  %s1411_s9 = int_to_ptr.vmem [resolvable:$false] %s1410_s9 }
 0x49f   : > { %s1412_s16 = scalar_lea.vmem %s1411_s9, 256  ;;  %p1413_p7 = scmp.lt.s32.totalorder %s964_s13, %s1411_s9 }
 0x4a0   : > { %p1414_p9 = scmp.lt.s32.totalorder %s1412_s16, %s1406_s24 }
 0x4a2   : > { %p1415_p11 = por %p1414_p9, %p1413_p7 }
 0x4a4   : > { %p1416_p13 = pnand %p1415_p11, %p1409_p1 }
 0x50f   : > { %v857_v56 = vpop.permute.xlu1 %856 }
 0x510   : > { %860 = vst.msk [vmem:[#allocation2] sm:$0xff] %vm859_vm5, %v857_v56 }
 0x517   : > { %v861_v57 = vld [vmem:[#allocation2] sm:$0xff] }
 0x518   : > { %1208 = vmatmul.mubr.msk.f32.vlgmr.msra.gmra.mxu0 %vm346_vm1, %v861_v57 }
 0x5d8   : > { %v942_v59 = vpop.f32.mrf.mxu0 }
 0x5d9   : > { %v943_v60 = vadd.f32 %v1113_v58, %v942_v59 }
 0x5da   : > { %v1209_v61 = vpop.f32.mrf.mxu0 }
 0x5db   : > { %946 = vst.msk [vmem:[%s325_s10] sm:$0xff] %vm346_vm1, %v943_v60 }
 0x5dc   : > { %1419 = shalt.err (!%p1416_p13)
}
 0x5dd   : > { %s1420_s19 = scalar_lea.hbm %s1753_s15, 128  ;;  %s1424_s20 = scalar_lea.hbm %s1806_s6, 512 }
 0x5de   : > { %p1421_p2 = scmp.ne.s32.totalorder %s1753_s15, %s1420_s19  ;;  %p1425_p6 = scmp.lt.s32.totalorder %s1753_s15, %s1806_s6 }
 0x5df   : > { %p1426_p8 = scmp.lt.s32.totalorder %s1424_s20, %s1420_s19 }
 0x5e0   : > { %p1422_p5 = pnand %p1421_p2, %p1607_p3 }
 0x5e1   : > { %p1427_p10 = por %p1426_p8, %p1425_p6 }
 0x5e2   : > { %p1423_p4 = pneg %p1422_p5 }
 0x5e4   : > { %p1428_p12 = pnand %p1427_p10, %p1423_p4 }
 0x5e6   : > { %1431 = shalt.err (!%p1428_p12)
}
 0x5e7   : > { %1222 = dma.vmem_to_hbm [thread:$0]  (%p1607_p3), %s964_s13, 128, %s1753_s15, %s948_s25  }
 0x5e8 PF: > { %p1244_p0 = scmp.ge.s32.totalorder %s1506_s28, 2  ;;  %s975_s14 = sand.u32 1, %s1478_s21  }
 0x5e9   : > { %p1816_p1 = scmp.ne.s32.totalorder %s1812_s12, 0  ;;  %s976_s7 = scalar_lea.sflag [#allocation5], %s975_s14 }
 0x5eb   : > { %p1235_p7 = pnand %p1244_p0, %p1816_p1 }
 0x5ed   : > { %p1236_p9 = pneg %p1235_p7 }
 0x5ef   : > { %1473 = dma.done.wait (%p1236_p9), %s976_s7, 128  }
 0x5f0   : > { %1475 = vsyncadd (%p1236_p9), %s976_s7, 4294967168  ;;  %s21_s28 = sadd.s32 1, %s1506_s28   ;;  %s1817_s11 = sld [smem:[#allocation13_spill]] }
 0x5f1   : > { %p18_p11 = scmp.ge.s32.totalorder %s21_s28, 6   ;;  %s1818_s13 = sld [smem:[#allocation14_spill]] }
 0x5f2   : > { %s1819_s21 = smov %s1482_s22  ;;  %s1820_s22 = smov %s1486_s23 }
 0x5f3   : > { %s1821_s23 = smov %s1634_s17  ;;  %s1822_s24 = smov %s1498_s26 }
 0x5f4   : > { %s1823_s25 = smov %s1502_s27  ;;  %20 = sbr.rel (!%p18_p11) target bundleno = 7 (0x7), region = 95 }
 0x5f6   : > { %s1824_s26 = smov %s1817_s11 }
 0x5f7   : > { %s1825_s27 = smov %s1818_s13 }
 0x5f9   :  { %981 = vsyncpa [#allocation4], 1 }
 0x5fa   :  { %983 = vsyncpa [#allocation4 + $0x1], 1 }
 0x5fb   :  { %984 = vsyncpa [#allocation7], 1 }
 0x5fc   :  { %985 = vsyncpa [#allocation5], 1 }
 0x5fd   :  { %987 = vsyncpa [#allocation5 + $0x1], 1 }

</bundles_post_ra>
